<compile_context>
chip_gen: v7x
topology: tpu7x:2x2x1
jax: 0.10.0
libtpu: 0.0.40
codegen_flags: <defaults>
</compile_context>

<pallas_src>
import jax
import jax.numpy as jnp
from jax.experimental import pallas as pl
from jax.experimental.pallas import tpu as pltpu


def _im2col(x, kh=3, kw=3):
    """x: [N, C, H, W] NCHW, stride=1, pad=1 -> patches [N, H*W, C*kh*kw]."""
    N, C, H, W = x.shape
    xp = jnp.pad(x, ((0, 0), (0, 0), (1, 1), (1, 1)))
    cols = []
    for i in range(kh):
        for j in range(kw):
            cols.append(xp[:, :, i:i + H, j:j + W])          # [N, C, H, W]
    patches = jnp.stack(cols, axis=2)                        # [N, C, kh*kw, H, W]
    patches = patches.transpose(0, 3, 4, 1, 2)               # [N, H, W, C, kh*kw]
    return patches.reshape(N, H * W, C * kh * kw)


def _siamese_kernel(p_ref, seg_ref, wc_ref, bc_ref, wf_ref, bf_ref, o_ref):
    # p_ref  : (B*HW, CK)   one Siamese branch's im2col patches (B images stacked)
    # seg_ref: (B, B*HW)    segmented-mean matrix (1/HW on each image's own rows)
    # wc_ref : (CK, C1)     conv weight     bc_ref: (1, C1) conv bias
    # wf_ref : (C1, D)      fc weight       bf_ref: (1, D)  fc bias
    # o_ref  : (1, B, D)    embeddings for this branch
    patches = p_ref[...].astype(jnp.bfloat16)
    wc = wc_ref[...].astype(jnp.bfloat16)
    conv = jnp.dot(patches, wc,
                   preferred_element_type=jnp.float32)               # [B*HW, C1] f32 acc
    conv = jnp.maximum(conv + bc_ref[...], 0.0)                      # bias + ReLU in f32
    # Per-image global average pool as an MXU matmul (avoids XLU sublane reduce).
    pooled = jnp.dot(seg_ref[...].astype(jnp.bfloat16),
                     conv.astype(jnp.bfloat16),
                     preferred_element_type=jnp.float32)             # [B, C1]
    emb = jnp.dot(pooled.astype(jnp.bfloat16),
                  wf_ref[...].astype(jnp.bfloat16),
                  preferred_element_type=jnp.float32) + bf_ref[...]  # [B, D]
    o_ref[0] = emb.astype(o_ref.dtype)


@jax.jit
def siamese_forward(input1, input2, params):
    """Shared-weight Siamese forward: returns (output1, output2), each [B, D]."""
    wc, bc, wf, bf = params
    B, C, H, W = input1.shape
    HW = H * W
    CK = wc.shape[0]
    C1 = wc.shape[1]
    D = wf.shape[1]

    # Both branches + the whole batch go through ONE pallas_call (shared weights).
    x_all = jnp.concatenate([input1, input2], axis=0)           # [2B, C, H, W]
    patches = _im2col(x_all).reshape(2 * B * HW, CK)            # [2B*HW, CK]

    # Constant segmented-mean matrix: seg[b, r] = 1/HW iff row r belongs to image b.
    row_img = jax.lax.broadcasted_iota(jnp.int32, (B, B * HW), 1) // HW
    img_id = jax.lax.broadcasted_iota(jnp.int32, (B, B * HW), 0)
    seg = (row_img == img_id).astype(jnp.float32) / HW          # [B, B*HW]

    out = pl.pallas_call(
        _siamese_kernel,
        out_shape=jax.ShapeDtypeStruct((2, B, D), jnp.float32),
        grid_spec=pl.GridSpec(
            grid=(2,),  # one step per Siamese branch -> both v7x TCs busy
            in_specs=[
                pl.BlockSpec((B * HW, CK), lambda g: (g, 0)),   # branch's patches
                pl.BlockSpec((B, B * HW), lambda g: (0, 0)),    # pooling matrix (resident)
                pl.BlockSpec((CK, C1), lambda g: (0, 0)),       # shared conv weight
                pl.BlockSpec((1, C1), lambda g: (0, 0)),
                pl.BlockSpec((C1, D), lambda g: (0, 0)),        # shared fc weight
                pl.BlockSpec((1, D), lambda g: (0, 0)),
            ],
            out_specs=pl.BlockSpec((1, B, D), lambda g: (g, 0, 0)),
        ),
        compiler_params=pltpu.CompilerParams(
            dimension_semantics=("parallel",)),
    )(patches, seg, wc, bc, wf, bf)

    return out[0], out[1]


def init_params(cin=4, c1=16, d=32, kh=3, kw=3):
    """Deterministic synthetic parameters (PyTorch-style shapes, then flattened)."""
    k1, k2, k3, k4 = jax.random.split(jax.random.PRNGKey(42), 4)
    # PyTorch Conv2d weight: [Cout, Cin, KH, KW]; flatten to [Cin*KH*KW, Cout]
    # matching the im2col patch layout (channel-major, then kernel index).
    wc_t = jax.random.normal(k1, (c1, cin, kh, kw), jnp.float32) * 0.1
    wc = wc_t.reshape(c1, cin * kh * kw).T                            # [CK, C1]
    bc = jax.random.normal(k2, (1, c1), jnp.float32) * 0.1
    # PyTorch Linear weight: [D, C1]; use its transpose [C1, D].
    wf_t = jax.random.normal(k3, (d, c1), jnp.float32) * 0.1
    wf = wf_t.T                                                       # [C1, D]
    bf = jax.random.normal(k4, (1, d), jnp.float32) * 0.1
    return wc, bc, wf, bf


if __name__ == "__main__":
    B, C, H, W = 2, 4, 16, 16
    key1, key2 = jax.random.split(jax.random.PRNGKey(0))
    input1 = jax.random.normal(key1, (B, C, H, W), jnp.float32)   # NCHW
    input2 = jax.random.normal(key2, (B, C, H, W), jnp.float32)   # NCHW

    params = init_params(cin=C, c1=16, d=32)

    out1, out2 = siamese_forward(input1, input2, params)
    jax.block_until_ready((out1, out2))

    assert out1.shape == (B, 32) and out2.shape == (B, 32)
    assert out1.dtype == jnp.float32 and out2.dtype == jnp.float32
    assert bool(jnp.all(jnp.isfinite(out1))) and bool(jnp.all(jnp.isfinite(out2)))
    print("KERNEL_OK")
</pallas_src>

<mosaic_0001>
module attributes {stable_mosaic.version = 11 : i64} {
  func.func @_siamese_kernel(%arg0: i32, %arg1: memref<512x36xf32, #tpu.memory_space<vmem>>, %arg2: memref<2x512xf32, #tpu.memory_space<vmem>>, %arg3: memref<36x16xf32, #tpu.memory_space<vmem>>, %arg4: memref<1x16xf32, #tpu.memory_space<vmem>>, %arg5: memref<16x32xf32, #tpu.memory_space<vmem>>, %arg6: memref<1x32xf32, #tpu.memory_space<vmem>>, %arg7: memref<1x2x32xf32, #tpu.memory_space<vmem>>) attributes {dimension_semantics = [#tpu.dimension_semantics<parallel>], iteration_bounds = array<i64: 2>, scalar_prefetch = 0 : i64, scratch_operands = 0 : i64, tpu.core_type = #tpu.core_type<tc>, window_params = [{transform_indices = @transform_0, window_bounds = array<i64: 512, 36>}, {pipeline_mode = #tpu.pipeline_mode<synchronous>, transform_indices = @transform_1, window_bounds = array<i64: 2, 512>}, {pipeline_mode = #tpu.pipeline_mode<synchronous>, transform_indices = @transform_2, window_bounds = array<i64: 36, 16>}, {pipeline_mode = #tpu.pipeline_mode<synchronous>, transform_indices = @transform_3, window_bounds = array<i64: 1, 16>}, {pipeline_mode = #tpu.pipeline_mode<synchronous>, transform_indices = @transform_4, window_bounds = array<i64: 16, 32>}, {pipeline_mode = #tpu.pipeline_mode<synchronous>, transform_indices = @transform_5, window_bounds = array<i64: 1, 32>}, {transform_indices = @transform_6, window_bounds = array<i64: 1, 2, 32>}]} {
    %c0 = arith.constant 0 : index
    %c0_0 = arith.constant 0 : index
    %0 = vector.load %arg1[%c0, %c0_0] : memref<512x36xf32, #tpu.memory_space<vmem>>, vector<512x36xf32>
    %1 = arith.truncf %0 : vector<512x36xf32> to vector<512x36xbf16>
    %c0_1 = arith.constant 0 : index
    %c0_2 = arith.constant 0 : index
    %2 = vector.load %arg3[%c0_1, %c0_2] : memref<36x16xf32, #tpu.memory_space<vmem>>, vector<36x16xf32>
    %3 = arith.truncf %2 : vector<36x16xf32> to vector<36x16xbf16>
    %cst = arith.constant dense<0.000000e+00> : vector<512x16xf32>
    %4 = tpu.matmul %1, %3, %cst {dimension_numbers = #tpu.dot_dimension_numbers<[1], [0], [0], [1], [0, 0, 1, 1], [], []>} : vector<512x36xbf16>, vector<36x16xbf16>, vector<512x16xf32> -> vector<512x16xf32>
    %c0_3 = arith.constant 0 : index
    %c0_4 = arith.constant 0 : index
    %5 = vector.load %arg4[%c0_3, %c0_4] : memref<1x16xf32, #tpu.memory_space<vmem>>, vector<1x16xf32>
    %6 = vector.broadcast %5 : vector<1x16xf32> to vector<512x16xf32>
    %7 = arith.addf %4, %6 : vector<512x16xf32>
    %cst_5 = arith.constant 0.000000e+00 : f32
    %8 = vector.broadcast %cst_5 : f32 to vector<512x16xf32>
    %9 = arith.maximumf %7, %8 : vector<512x16xf32>
    %c0_6 = arith.constant 0 : index
    %c0_7 = arith.constant 0 : index
    %10 = vector.load %arg2[%c0_6, %c0_7] : memref<2x512xf32, #tpu.memory_space<vmem>>, vector<2x512xf32>
    %11 = arith.truncf %10 : vector<2x512xf32> to vector<2x512xbf16>
    %12 = arith.truncf %9 : vector<512x16xf32> to vector<512x16xbf16>
    %cst_8 = arith.constant dense<0.000000e+00> : vector<2x16xf32>
    %13 = tpu.matmul %11, %12, %cst_8 {dimension_numbers = #tpu.dot_dimension_numbers<[1], [0], [0], [1], [0, 0, 1, 1], [], []>} : vector<2x512xbf16>, vector<512x16xbf16>, vector<2x16xf32> -> vector<2x16xf32>
    %14 = arith.truncf %13 : vector<2x16xf32> to vector<2x16xbf16>
    %c0_9 = arith.constant 0 : index
    %c0_10 = arith.constant 0 : index
    %15 = vector.load %arg5[%c0_9, %c0_10] : memref<16x32xf32, #tpu.memory_space<vmem>>, vector<16x32xf32>
    %16 = arith.truncf %15 : vector<16x32xf32> to vector<16x32xbf16>
    %cst_11 = arith.constant dense<0.000000e+00> : vector<2x32xf32>
    %17 = tpu.matmul %14, %16, %cst_11 {dimension_numbers = #tpu.dot_dimension_numbers<[1], [0], [0], [1], [0, 0, 1, 1], [], []>} : vector<2x16xbf16>, vector<16x32xbf16>, vector<2x32xf32> -> vector<2x32xf32>
    %c0_12 = arith.constant 0 : index
    %c0_13 = arith.constant 0 : index
    %18 = vector.load %arg6[%c0_12, %c0_13] : memref<1x32xf32, #tpu.memory_space<vmem>>, vector<1x32xf32>
    %19 = vector.broadcast %18 : vector<1x32xf32> to vector<2x32xf32>
    %20 = arith.addf %17, %19 : vector<2x32xf32>
    %c0_14 = arith.constant 0 : index
    %c0_15 = arith.constant 0 : index
    %c0_16 = arith.constant 0 : index
    %21 = vector.load %arg7[%c0_14, %c0_15, %c0_16] : memref<1x2x32xf32, #tpu.memory_space<vmem>>, vector<1x2x32xf32>
    %22 = vector.shape_cast %21 : vector<1x2x32xf32> to vector<2x32xf32>
    %23 = vector.shape_cast %20 : vector<2x32xf32> to vector<1x2x32xf32>
    tpu.vector_store %arg7[%c0_14, %c0_15, %c0_16], %23 {strides = array<i32>} : memref<1x2x32xf32, #tpu.memory_space<vmem>>, vector<1x2x32xf32>,
    return
  }
  func.func @transform_0(%arg0: i32) -> (i32, i32) {
    %c0_i32 = arith.constant 0 : i32
    %c0_i32_0 = arith.constant 0 : i32
    return %arg0, %c0_i32 : i32, i32
  }
  func.func @transform_1(%arg0: i32) -> (i32, i32) {
    %c0_i32 = arith.constant 0 : i32
    %c0_i32_0 = arith.constant 0 : i32
    %c0_i32_1 = arith.constant 0 : i32
    return %c0_i32, %c0_i32_0 : i32, i32
  }
  func.func @transform_2(%arg0: i32) -> (i32, i32) {
    %c0_i32 = arith.constant 0 : i32
    %c0_i32_0 = arith.constant 0 : i32
    %c0_i32_1 = arith.constant 0 : i32
    return %c0_i32, %c0_i32_0 : i32, i32
  }
  func.func @transform_3(%arg0: i32) -> (i32, i32) {
    %c0_i32 = arith.constant 0 : i32
    %c0_i32_0 = arith.constant 0 : i32
    %c0_i32_1 = arith.constant 0 : i32
    return %c0_i32, %c0_i32_0 : i32, i32
  }
  func.func @transform_4(%arg0: i32) -> (i32, i32) {
    %c0_i32 = arith.constant 0 : i32
    %c0_i32_0 = arith.constant 0 : i32
    %c0_i32_1 = arith.constant 0 : i32
    return %c0_i32, %c0_i32_0 : i32, i32
  }
  func.func @transform_5(%arg0: i32) -> (i32, i32) {
    %c0_i32 = arith.constant 0 : i32
    %c0_i32_0 = arith.constant 0 : i32
    %c0_i32_1 = arith.constant 0 : i32
    return %c0_i32, %c0_i32_0 : i32, i32
  }
  func.func @transform_6(%arg0: i32) -> (i32, i32, i32) {
    %c0_i32 = arith.constant 0 : i32
    %c0_i32_0 = arith.constant 0 : i32
    %c0_i32_1 = arith.constant 0 : i32
    return %arg0, %c0_i32, %c0_i32_0 : i32, i32, i32
  }
}

</mosaic_0001>

<bundles_post_ra>
// kernel: siamese_forward.1
= control target key start
LH: loop header
LB: loop body
LE: loop exit
PB: predicated region body
PF: predicated region fallthrough
CT: control target
= control target key end

     0   :  { %s1335_s21 = smov 0   ;;  %s1617_s0 = inlined_call_operand.vmem [shape: f32[1024,36], index: 0, kind: input, shape index: {}]   ;;  %s1618_s1 = inlined_call_operand.vmem [shape: f32[2,512], index: 1, kind: input, shape index: {}]   ;;  %s1619_s2 = inlined_call_operand.vmem [shape: f32[36,16], index: 2, kind: input, shape index: {}]   ;;  %s1620_s3 = inlined_call_operand.vmem [shape: f32[1,16], index: 3, kind: input, shape index: {}]   ;;  %s1621_s4 = inlined_call_operand.vmem [shape: f32[16,32], index: 4, kind: input, shape index: {}]   ;;  %s1622_s5 = inlined_call_operand.vmem [shape: f32[1,32], index: 5, kind: input, shape index: {}]   ;;  %s1623_s6 = inlined_call_operand.vmem [shape: f32[2,2,32], index: 6, kind: output, shape index: {}]  }
   0x1 LB: > { %s1341_s22 = sadd.s32 4294967295, %s1295_s21   ;;  %p1071_p0 = scmp.ge.s32.totalorder %s1295_s21, 1  ;;  %s1295_s21 = sphi %s1335_s21, %s16_s21  }
   0x2   : > { %p213_p1 = scmp.lt.s32.totalorder %s1295_s21, 3 }
   0x4   : > { %p214_p2 = pnand %p1071_p0, %p213_p1 }
   0x5   : > { %v349_v0 = vld [vmem:[%s1619_s2] sm:$0xff] (!%p214_p2)  ;;  %v350_v1 = vld [vmem:[%s1619_s2 + $0x8] sm:$0xff] (!%p214_p2)  ;;  %v351_v2 = vld [vmem:[%s1619_s2 + $0x10] sm:$0xff] (!%p214_p2)  ;;  %s1072_s29 = sshll.u32 (!%p214_p2), %s1341_s22, 6  ;;  %vm461_vm0 = vcmask (!%p214_p2), 1041408   ;;  %vm364_vm1 = vcmask (!%p214_p2), 293888  }
   0x6   : > { %217 = sbr.rel (%p214_p2) target bundleno = 771 (0x303), region = 44  ;;  %v354_v3 = vpack.c.bf16 (!%p214_p2), %v350_v1, %v349_v0  ;;  %v352_v4 = vld [vmem:[%s1619_s2 + $0x18] sm:$0xff] (!%p214_p2)  ;;  %p243_p3 = scmp.lt.s32.totalorder (!%p214_p2), %s1072_s29, 127  ;;  %v353_v6 = vld [vmem:[%s1619_s2 + $0x20] sm:$0xf] (!%p214_p2)  ;;  %vm1299_vm2 = vmmov (!%p214_p2), 0  }
   0x7   : > { %v355_v5 = vpack.c.bf16 (!%p214_p2), %v352_v4, %v351_v2  ;;  %v356_v7 = vpack.c.bf16 (!%p214_p2), %v353_v6, %v353_v6  ;;  %vm968_vm3 = vcmask (!%p214_p2), 130048   ;;  %p248_p4 = scmp.lt.s32.totalorder (!%p214_p2), %s1341_s22, 1  ;;  %vm1012_vm4 = vcmask (!%p214_p2), 254976  }
   0x8   : > { %1193 = vmatprep.subr.bf16.mxu0 (!%p214_p2), %v354_v3  ;;  %1269 = vmatprep.subr.bf16.mxu1 (!%p214_p2), %v354_v3 }
   0x9   : > { %1194 = vmatpush3.bf16.msra.mxu0 (!%p214_p2), %v354_v3  ;;  %1272 = vmatpush3.bf16.msra.mxu1 (!%p214_p2), %v354_v3  ;;  %v463_v13 = vsel (!%p214_p2), %vm461_vm0, %v356_v7, 0 }
   0xa   : > { %1195 = vmatprep.subr.bf16.mxu0 (!%p214_p2), %v355_v5  ;;  %1270 = vmatprep.subr.bf16.mxu1 (!%p214_p2), %v355_v5 }
   0xd   : > { %s1625_s29 = smov (!%p243_p3, %s1072_s29), 127  ;;  %1196 = vmatpush3.bf16.msra.mxu0 %v355_v5  ;;  %1273 = vmatpush3.bf16.msra.mxu1 %v355_v5  ;;  %s1627_s22 = smov (!%p248_p4, %s1341_s22), 1 }
   0xe   : > { %s1073_s10 = sshll.u32 %s1625_s29, 3  ;;  %1275 = vmatprep.subr.msk.bf16.mxu0 %vm461_vm0, %v356_v7  ;;  %1276 = vmatprep.subr.msk.bf16.mxu1 %vm461_vm0, %v356_v7  ;;  %s1074_s24 = sshll.u32 %s1627_s22, 1 }
   0xf   : > { %s1364_s13 = scalar_lea.vmem %s1617_s0, %s1073_s10  ;;  %s251_s29 = scalar_lea.vmem %s1623_s6, %s1074_s24 }
  0x10   : > { %v253_v8 = vld [vmem:[%s1364_s13] sm:$0xff]  ;;  %v254_v9 = vld [vmem:[%s1364_s13 + $0x8] sm:$0xff]  ;;  %v255_v11 = vld [vmem:[%s1364_s13 + $0x10] sm:$0xff] }
  0x11   : > { %v317_v10 = vpack.c.bf16 %v254_v9, %v253_v8  ;;  %v256_v12 = vld [vmem:[%s1364_s13 + $0x18] sm:$0xff]  ;;  %v257_v14 = vld [vmem:[%s1364_s13 + $0x20] sm:$0xff]  ;;  %v258_v15 = vld [vmem:[%s1364_s13 + $0x28] sm:$0xff]  ;;  %1198 = vmatpush3.bf16.msra.mxu0 %v463_v13  ;;  %1274 = vmatpush3.bf16.msra.mxu1 %v463_v13 }
  0x12   : > { %v318_v16 = vpack.c.bf16 %v256_v12, %v255_v11  ;;  %v319_v17 = vpack.c.bf16 %v258_v15, %v257_v14  ;;  %v259_v18 = vld [vmem:[%s1364_s13 + $0x30] sm:$0xff]  ;;  %v260_v19 = vld [vmem:[%s1364_s13 + $0x38] sm:$0xff]  ;;  %v261_v20 = vld [vmem:[%s1364_s13 + $0x40] sm:$0xff] }
  0x13   : > { %1199 = vmatprep.mubr.msk.bf16.mxu0 %vm364_vm1, %v317_v10  ;;  %v262_v21 = vld [vmem:[%s1364_s13 + $0x48] sm:$0xff]  ;;  %v297_v22 = vld [vmem:[%s1364_s13 + $0x160] sm:$0xff]  ;;  %v299_v25 = vld [vmem:[%s1364_s13 + $0x170] sm:$0xff]  ;;  %v320_v27 = vpack.c.bf16 %v260_v19, %v259_v18 }
  0x14   : > { %1200 = vmatmul.mubr.msk.bf16.vlgmr.msra.gmra.mrb[0].mxu0 %vm364_vm1, %v318_v16  ;;  %v298_v23 = vld [vmem:[%s1364_s13 + $0x168] sm:$0xff]  ;;  %v300_v26 = vld [vmem:[%s1364_s13 + $0x178] sm:$0xff]  ;;  %v301_v29 = vld [vmem:[%s1364_s13 + $0x180] sm:$0xff]  ;;  %v321_v31 = vpack.c.bf16 %v262_v21, %v261_v20 }
  0x15   : > { %1203 = vmatprep.mubr.msk.bf16.mxu0 %vm364_vm1, %v319_v17  ;;  %v339_v24 = vpack.c.bf16 %v298_v23, %v297_v22  ;;  %v340_v28 = vpack.c.bf16 %v300_v26, %v299_v25  ;;  %v302_v30 = vld [vmem:[%s1364_s13 + $0x188] sm:$0xff]  ;;  %v303_v33 = vld [vmem:[%s1364_s13 + $0x190] sm:$0xff]  ;;  %v304_v34 = vld [vmem:[%s1364_s13 + $0x198] sm:$0xff] }
  0x16   : > { %v341_v32 = vpack.c.bf16 %v302_v30, %v301_v29  ;;  %v305_v35 = vld [vmem:[%s1364_s13 + $0x1a0] sm:$0xff]  ;;  %v306_v36 = vld [vmem:[%s1364_s13 + $0x1a8] sm:$0xff]  ;;  %v263_v37 = vld [vmem:[%s1364_s13 + $0x50] sm:$0xff]  ;;  %v342_v41 = vpack.c.bf16 %v304_v34, %v303_v33 }
  0x17   : > { %1243 = vmatprep.mubr.msk.bf16.mxu1 %vm364_vm1, %v339_v24  ;;  %v264_v38 = vld [vmem:[%s1364_s13 + $0x58] sm:$0xff]  ;;  %v265_v39 = vld [vmem:[%s1364_s13 + $0x60] sm:$0xff]  ;;  %v266_v40 = vld [vmem:[%s1364_s13 + $0x68] sm:$0xff]  ;;  %v343_v42 = vpack.c.bf16 %v306_v36, %v305_v35 }
  0x18   : > { %1244 = vmatmul.mubr.msk.bf16.vlgmr.msra.gmra.mrb[0].mxu1 %vm364_vm1, %v340_v28  ;;  %v322_v43 = vpack.c.bf16 %v264_v38, %v263_v37  ;;  %v323_v44 = vpack.c.bf16 %v266_v40, %v265_v39  ;;  %v307_v45 = vld [vmem:[%s1364_s13 + $0x1b0] sm:$0xff]  ;;  %v308_v46 = vld [vmem:[%s1364_s13 + $0x1b8] sm:$0xff]  ;;  %v309_v47 = vld [vmem:[%s1364_s13 + $0x1c0] sm:$0xff] }
  0x19   : > { %1247 = vmatprep.mubr.msk.bf16.mxu1 %vm364_vm1, %v341_v32  ;;  %v310_v48 = vld [vmem:[%s1364_s13 + $0x1c8] sm:$0xff]  ;;  %v267_v49 = vld [vmem:[%s1364_s13 + $0x70] sm:$0xff]  ;;  %v268_v50 = vld [vmem:[%s1364_s13 + $0x78] sm:$0xff]  ;;  %v344_v53 = vpack.c.bf16 %v308_v46, %v307_v45 }
  0x1a   : > { %v269_v51 = vld [vmem:[%s1364_s13 + $0x80] sm:$0xff]  ;;  %v270_v52 = vld [vmem:[%s1364_s13 + $0x88] sm:$0xff]  ;;  %v345_v54 = vpack.c.bf16 %v310_v48, %v309_v47  ;;  %v324_v55 = vpack.c.bf16 %v268_v50, %v267_v49  ;;  %v311_v57 = vld [vmem:[%s1364_s13 + $0x1d0] sm:$0xff] }
  0x1b   : > { %v325_v56 = vpack.c.bf16 %v270_v52, %v269_v51  ;;  %v312_v58 = vld [vmem:[%s1364_s13 + $0x1d8] sm:$0xff]  ;;  %v313_v59 = vld [vmem:[%s1364_s13 + $0x1e0] sm:$0xff]  ;;  %v314_v60 = vld [vmem:[%s1364_s13 + $0x1e8] sm:$0xff] }
  0x1c   : > { %1204 = vmatmul.mubr.msk.bf16.gmra.mrb[4].mxu0 %vm364_vm1, %v320_v27  ;;  %v271_v61 = vld [vmem:[%s1364_s13 + $0x90] sm:$0xff]  ;;  %v272_v62 = vld [vmem:[%s1364_s13 + $0x98] sm:$0xff]  ;;  %v273_v63 = vld [vmem:[%s1364_s13 + $0xa0] sm:$0xff]  ;;  %v346_v1 = vpack.c.bf16 %v312_v58, %v311_v57  ;;  %v347_v2 = vpack.c.bf16 %v314_v60, %v313_v59 }
  0x1d   : > { %1207 = vmatprep.mubr.msk.bf16.mxu0 %vm364_vm1, %v321_v31  ;;  %v274_v0 = vld [vmem:[%s1364_s13 + $0xa8] sm:$0xff]  ;;  %v326_v3 = vpack.c.bf16 %v272_v62, %v271_v61  ;;  %v315_v5 = vld [vmem:[%s1364_s13 + $0x1f0] sm:$0xff]  ;;  %v316_v6 = vld [vmem:[%s1364_s13 + $0x1f8] sm:$0xff] }
  0x1e   : > { %v327_v4 = vpack.c.bf16 %v274_v0, %v273_v63  ;;  %v275_v7 = vld [vmem:[%s1364_s13 + $0xb0] sm:$0xff]  ;;  %v276_v8 = vld [vmem:[%s1364_s13 + $0xb8] sm:$0xff]  ;;  %v277_v9 = vld [vmem:[%s1364_s13 + $0xc0] sm:$0xff]  ;;  %v348_v11 = vpack.c.bf16 %v316_v6, %v315_v5 }
  0x1f   : > { %v278_v10 = vld [vmem:[%s1364_s13 + $0xc8] sm:$0xff]  ;;  %v328_v12 = vpack.c.bf16 %v276_v8, %v275_v7  ;;  %v279_v14 = vld [vmem:[%s1364_s13 + $0xd0] sm:$0xff]  ;;  %v280_v15 = vld [vmem:[%s1364_s13 + $0xd8] sm:$0xff] }
  0x20   : > { %1248 = vmatmul.mubr.msk.bf16.gmra.mrb[4].mxu1 %vm364_vm1, %v342_v41  ;;  %v329_v13 = vpack.c.bf16 %v278_v10, %v277_v9  ;;  %v281_v16 = vld [vmem:[%s1364_s13 + $0xe0] sm:$0xff]  ;;  %v282_v17 = vld [vmem:[%s1364_s13 + $0xe8] sm:$0xff]  ;;  %v330_v18 = vpack.c.bf16 %v280_v15, %v279_v14  ;;  %v283_v20 = vld [vmem:[%s1364_s13 + $0xf0] sm:$0xff]  ;;  %v1297_v41 = vmov 1983009808  }
  0x21   : > { %1251 = vmatprep.mubr.msk.bf16.mxu1 %vm364_vm1, %v343_v42  ;;  %v331_v19 = vpack.c.bf16 %v282_v17, %v281_v16  ;;  %v284_v21 = vld [vmem:[%s1364_s13 + $0xf8] sm:$0xff]  ;;  %v285_v22 = vld [vmem:[%s1364_s13 + $0x100] sm:$0xff]  ;;  %v286_v23 = vld [vmem:[%s1364_s13 + $0x108] sm:$0xff]  ;;  %v822_v42 = vunpack.c.l.s4 %v1297_v41 }
  0x22   : > { %v332_v24 = vpack.c.bf16 %v284_v21, %v283_v20  ;;  %v333_v25 = vpack.c.bf16 %v286_v23, %v285_v22  ;;  %v287_v26 = vld [vmem:[%s1364_s13 + $0x110] sm:$0xff]  ;;  %v288_v27 = vld [vmem:[%s1364_s13 + $0x118] sm:$0xff]  ;;  %v289_v28 = vld [vmem:[%s1364_s13 + $0x120] sm:$0xff] }
  0x23   : > { %v290_v29 = vld [vmem:[%s1364_s13 + $0x128] sm:$0xff]  ;;  %v334_v30 = vpack.c.bf16 %v288_v27, %v287_v26  ;;  %v291_v32 = vld [vmem:[%s1364_s13 + $0x130] sm:$0xff]  ;;  %v292_v33 = vld [vmem:[%s1364_s13 + $0x138] sm:$0xff] }
  0x24   : > { %1208 = vmatmul.mubr.msk.bf16.gmra.mrb[8].mxu0 %vm364_vm1, %v322_v43  ;;  %v335_v31 = vpack.c.bf16 %v290_v29, %v289_v28  ;;  %v293_v34 = vld [vmem:[%s1364_s13 + $0x140] sm:$0xff]  ;;  %v294_v35 = vld [vmem:[%s1364_s13 + $0x148] sm:$0xff]  ;;  %v336_v36 = vpack.c.bf16 %v292_v33, %v291_v32  ;;  %v295_v38 = vld [vmem:[%s1364_s13 + $0x150] sm:$0xff]  ;;  %v824_v43 = vlaneseq }
  0x25   : > { %1211 = vmatprep.mubr.msk.bf16.mxu0 %vm364_vm1, %v323_v44  ;;  %v337_v37 = vpack.c.bf16 %v294_v35, %v293_v34  ;;  %v296_v39 = vld [vmem:[%s1364_s13 + $0x158] sm:$0xff]  ;;  %v823_v44 = vunpack.c.0.s8 %v822_v42  ;;  %v818_v47 = vld [vmem:[%s1618_s1] sm:$0xff] }
  0x26   : > { %v338_v40 = vpack.c.bf16 %v296_v39, %v295_v38  ;;  %v825_v45 = vshrl.u32 %v824_v43, 7  ;;  %v820_v51 = vcombine.high %v818_v47, %v818_v47 }
  0x28   : > { %1252 = vmatmul.mubr.msk.bf16.gmra.mrb[8].mxu1 %vm364_vm1, %v344_v53  ;;  %v826_v46 = vsub.s32 %v823_v44, %v825_v45  ;;  %v1474_v53 = vld [vmem:[%s1620_s3] ss:$0 sm:$0xff] }
  0x29   : > { %1255 = vmatprep.mubr.msk.bf16.mxu1 %vm364_vm1, %v345_v54 }
  0x2a   : > { %v1465_v48 = vrot.slane %v818_v47, %v826_v46  ;;  %v1469_v52 = vrot.slane %v820_v51, %v826_v46 }
  0x2c   : > { %1212 = vmatmul.mubr.msk.bf16.gmra.mrb[12].mxu0 %vm364_vm1, %v324_v55  ;;  %v835_v49 = vcombine.high %v1465_v48, %v1465_v48 }
  0x2d   : > { %1215 = vmatprep.mubr.msk.bf16.mxu0 %vm364_vm1, %v325_v56 }
  0x2e   : > { %v842_v50 = vpack.c.bf16 %v835_v49, %v835_v49 }
  0x30   : > { %1256 = vmatmul.mubr.msk.bf16.gmra.mrb[12].mxu1 %vm364_vm1, %v346_v1 }
  0x31   : > { %1259 = vmatprep.mubr.msk.bf16.mxu1 %vm364_vm1, %v347_v2 }
  0x34   : > { %1216 = vmatmul.mubr.msk.bf16.gmra.mrb[16].mxu0 %vm364_vm1, %v326_v3 }
  0x35   : > { %1219 = vmatprep.mubr.msk.bf16.mxu0 %vm364_vm1, %v327_v4 }
  0x38   : > { %1260 = vmatmul.mubr.msk.bf16.gmra.mrb[16].mxu1 %vm364_vm1, %v348_v11 }
  0x39   : > { %909 = vmatprep.mubr.bf16.mxu1 %v842_v50 }
  0x3c   : > { %1220 = vmatmul.mubr.msk.bf16.gmra.mrb[20].mxu0 %vm364_vm1, %v328_v12 }
  0x3d   : > { %1223 = vmatprep.mubr.msk.bf16.mxu0 %vm364_vm1, %v329_v13 }
  0x44   : > { %1224 = vmatmul.mubr.msk.bf16.gmra.mrb[24].mxu0 %vm364_vm1, %v330_v18 }
  0x45   : > { %1227 = vmatprep.mubr.msk.bf16.mxu0 %vm364_vm1, %v331_v19 }
  0x4c   : > { %1228 = vmatmul.mubr.msk.bf16.gmra.mrb[28].mxu0 %vm364_vm1, %v332_v24 }
  0x4d   : > { %1231 = vmatprep.mubr.msk.bf16.mxu0 %vm364_vm1, %v333_v25 }
  0x54   : > { %1232 = vmatmul.mubr.msk.bf16.gmra.mrb[32].mxu0 %vm364_vm1, %v334_v30 }
  0x55   : > { %1235 = vmatprep.mubr.msk.bf16.mxu0 %vm364_vm1, %v335_v31 }
  0x5c   : > { %1236 = vmatmul.mubr.msk.bf16.gmra.mrb[36].mxu0 %vm364_vm1, %v336_v36 }
  0x5d   : > { %1239 = vmatprep.mubr.msk.bf16.mxu0 %vm364_vm1, %v337_v37 }
  0x64   : > { %1240 = vmatmul.mubr.msk.bf16.gmra.mrb[40].mxu0 %vm364_vm1, %v338_v40 }
  0xe7   : > { %v1201_v54 = vpop.f32.mrb[0].mxu0 }
  0xe8   : > { %v508_v55 = vadd.f32 %v1201_v54, %v1474_v53  ;;  %v499_v56 = vpop.f32.mrb[1].mxu0 }
  0xe9   : > { %v500_v57 = vadd.f32 %v1474_v53, %v499_v56  ;;  %v1202_v58 = vpop.f32.mrb[2].mxu0 }
  0xea   : > { %v511_v59 = vadd.f32 %v1202_v58, %v1474_v53  ;;  %v502_v60 = vpop.f32.mrb[3].mxu0  ;;  %v756_v62 = vmax.f32 %v508_v55, 0.0 }
  0xeb   : > { %v503_v61 = vadd.f32 %v1474_v53, %v502_v60  ;;  %v754_v0 = vmax.f32 %v500_v57, 0.0  ;;  %v1245_v2 = vpop.f32.mrb[0].mxu1 }
  0xec   : > { %v757_v63 = vmax.f32 %v511_v59, 0.0  ;;  %v684_v4 = vadd.f32 %v1245_v2, %v1474_v53  ;;  %v675_v5 = vpop.f32.mrb[1].mxu1 }
  0xed   : > { %v755_v1 = vmax.f32 %v503_v61, 0.0  ;;  %v676_v8 = vadd.f32 %v1474_v53, %v675_v5  ;;  %v1246_v9 = vpop.f32.mrb[2].mxu1 }
  0xee   : > { %v1480_v3 = vpack.c.bf16 %v757_v63, %v756_v62  ;;  %v800_v12 = vmax.f32 %v684_v4, 0.0  ;;  %v687_v13 = vadd.f32 %v1246_v9, %v1474_v53  ;;  %v678_v14 = vpop.f32.mrb[3].mxu1 }
  0xef   : > { %v1483_v6 = vpack.c.bf16 %v755_v1, %v754_v0  ;;  %v1205_v7 = vpop.f32.mrb[4].mxu0  ;;  %v798_v17 = vmax.f32 %v676_v8, 0.0  ;;  %v679_v18 = vadd.f32 %v1474_v53, %v678_v14 }
  0xf0   : > { %v524_v10 = vadd.f32 %v1205_v7, %v1474_v53  ;;  %v515_v11 = vpop.f32.mrb[5].mxu0  ;;  %v801_v21 = vmax.f32 %v687_v13, 0.0 }
  0xf1   : > { %v516_v15 = vadd.f32 %v1474_v53, %v515_v11  ;;  %v1206_v16 = vpop.f32.mrb[6].mxu0  ;;  %v799_v23 = vmax.f32 %v679_v18, 0.0 }
  0xf2   : > { %v527_v19 = vadd.f32 %v1206_v16, %v1474_v53  ;;  %v518_v20 = vpop.f32.mrb[7].mxu0  ;;  %v760_v24 = vmax.f32 %v524_v10, 0.0  ;;  %v1492_v26 = vpack.c.bf16 %v801_v21, %v800_v12 }
  0xf3   : > { %v519_v22 = vadd.f32 %v1474_v53, %v518_v20  ;;  %v758_v27 = vmax.f32 %v516_v15, 0.0  ;;  %v1494_v29 = vpack.c.bf16 %v799_v23, %v798_v17  ;;  %v1249_v30 = vpop.f32.mrb[4].mxu1 }
  0xf4   : > { %v761_v25 = vmax.f32 %v527_v19, 0.0  ;;  %v700_v32 = vadd.f32 %v1249_v30, %v1474_v53  ;;  %v691_v33 = vpop.f32.mrb[5].mxu1 }
  0xf5   : > { %v759_v28 = vmax.f32 %v519_v22, 0.0  ;;  %v692_v36 = vadd.f32 %v1474_v53, %v691_v33  ;;  %v1250_v37 = vpop.f32.mrb[6].mxu1 }
  0xf6   : > { %v1496_v31 = vpack.c.bf16 %v761_v25, %v760_v24  ;;  %v804_v40 = vmax.f32 %v700_v32, 0.0  ;;  %v703_v41 = vadd.f32 %v1250_v37, %v1474_v53  ;;  %v694_v42 = vpop.f32.mrb[7].mxu1 }
  0xf7   : > { %v1499_v34 = vpack.c.bf16 %v759_v28, %v758_v27  ;;  %v1209_v35 = vpop.f32.mrb[8].mxu0  ;;  %v802_v45 = vmax.f32 %v692_v36, 0.0  ;;  %v695_v46 = vadd.f32 %v1474_v53, %v694_v42 }
  0xf8   : > { %v540_v38 = vadd.f32 %v1209_v35, %v1474_v53  ;;  %v531_v39 = vpop.f32.mrb[9].mxu0  ;;  %v805_v50 = vmax.f32 %v703_v41, 0.0 }
  0xf9   : > { %v532_v43 = vadd.f32 %v1474_v53, %v531_v39  ;;  %v1210_v44 = vpop.f32.mrb[10].mxu0  ;;  %v803_v54 = vmax.f32 %v695_v46, 0.0 }
  0xfa   : > { %v543_v47 = vadd.f32 %v1210_v44, %v1474_v53  ;;  %v534_v49 = vpop.f32.mrb[11].mxu0  ;;  %v764_v55 = vmax.f32 %v540_v38, 0.0  ;;  %v1508_v57 = vpack.c.bf16 %v805_v50, %v804_v40 }
  0xfb   : > { %v535_v51 = vadd.f32 %v1474_v53, %v534_v49  ;;  %v762_v58 = vmax.f32 %v532_v43, 0.0  ;;  %v1510_v60 = vpack.c.bf16 %v803_v54, %v802_v45  ;;  %v1253_v61 = vpop.f32.mrb[8].mxu1 }
  0xfc   : > { %v765_v56 = vmax.f32 %v543_v47, 0.0  ;;  %v716_v63 = vadd.f32 %v1253_v61, %v1474_v53  ;;  %v707_v0 = vpop.f32.mrb[9].mxu1 }
  0xfd   : > { %v763_v59 = vmax.f32 %v535_v51, 0.0  ;;  %v708_v4 = vadd.f32 %v1474_v53, %v707_v0  ;;  %v1254_v5 = vpop.f32.mrb[10].mxu1 }
  0xfe   : > { %v1512_v62 = vpack.c.bf16 %v765_v56, %v764_v55  ;;  %v808_v9 = vmax.f32 %v716_v63, 0.0  ;;  %v719_v10 = vadd.f32 %v1254_v5, %v1474_v53  ;;  %v710_v11 = vpop.f32.mrb[11].mxu1 }
  0xff   : > { %v1515_v1 = vpack.c.bf16 %v763_v59, %v762_v58  ;;  %v1213_v2 = vpop.f32.mrb[12].mxu0  ;;  %v806_v14 = vmax.f32 %v708_v4, 0.0  ;;  %v711_v15 = vadd.f32 %v1474_v53, %v710_v11 }
 0x100   : > { %v556_v7 = vadd.f32 %v1213_v2, %v1474_v53  ;;  %v547_v8 = vpop.f32.mrb[13].mxu0  ;;  %v809_v18 = vmax.f32 %v719_v10, 0.0 }
 0x101   : > { %v548_v12 = vadd.f32 %v1474_v53, %v547_v8  ;;  %v1214_v13 = vpop.f32.mrb[14].mxu0  ;;  %v807_v20 = vmax.f32 %v711_v15, 0.0 }
 0x102   : > { %v559_v16 = vadd.f32 %v1214_v13, %v1474_v53  ;;  %v550_v17 = vpop.f32.mrb[15].mxu0  ;;  %v768_v21 = vmax.f32 %v556_v7, 0.0  ;;  %v1524_v23 = vpack.c.bf16 %v809_v18, %v808_v9 }
 0x103   : > { %v551_v19 = vadd.f32 %v1474_v53, %v550_v17  ;;  %v766_v24 = vmax.f32 %v548_v12, 0.0  ;;  %v1526_v27 = vpack.c.bf16 %v807_v20, %v806_v14  ;;  %v1257_v28 = vpop.f32.mrb[12].mxu1 }
 0x104   : > { %v769_v22 = vmax.f32 %v559_v16, 0.0  ;;  %v732_v32 = vadd.f32 %v1257_v28, %v1474_v53  ;;  %v723_v33 = vpop.f32.mrb[13].mxu1 }
 0x105   : > { %v767_v25 = vmax.f32 %v551_v19, 0.0  ;;  %v724_v37 = vadd.f32 %v1474_v53, %v723_v33  ;;  %v1258_v38 = vpop.f32.mrb[14].mxu1 }
 0x106   : > { %v1528_v30 = vpack.c.bf16 %v769_v22, %v768_v21  ;;  %v812_v41 = vmax.f32 %v732_v32, 0.0  ;;  %v735_v42 = vadd.f32 %v1258_v38, %v1474_v53  ;;  %v726_v43 = vpop.f32.mrb[15].mxu1 }
 0x107   : > { %v1531_v35 = vpack.c.bf16 %v767_v25, %v766_v24  ;;  %v1217_v36 = vpop.f32.mrb[16].mxu0  ;;  %v810_v46 = vmax.f32 %v724_v37, 0.0  ;;  %v727_v47 = vadd.f32 %v1474_v53, %v726_v43 }
 0x108   : > { %v572_v39 = vadd.f32 %v1217_v36, %v1474_v53  ;;  %v563_v40 = vpop.f32.mrb[17].mxu0  ;;  %v813_v51 = vmax.f32 %v735_v42, 0.0 }
 0x109   : > { %v564_v44 = vadd.f32 %v1474_v53, %v563_v40  ;;  %v1218_v45 = vpop.f32.mrb[18].mxu0  ;;  %v811_v55 = vmax.f32 %v727_v47, 0.0 }
 0x10a   : > { %v575_v49 = vadd.f32 %v1218_v45, %v1474_v53  ;;  %v566_v50 = vpop.f32.mrb[19].mxu0  ;;  %v772_v56 = vmax.f32 %v572_v39, 0.0  ;;  %v1540_v59 = vpack.c.bf16 %v813_v51, %v812_v41 }
 0x10b   : > { %v567_v54 = vadd.f32 %v1474_v53, %v566_v50  ;;  %v770_v61 = vmax.f32 %v564_v44, 0.0  ;;  %v1542_v0 = vpack.c.bf16 %v811_v55, %v810_v46  ;;  %v1261_v2 = vpop.f32.mrb[16].mxu1 }
 0x10c   : > { %v773_v58 = vmax.f32 %v575_v49, 0.0  ;;  %v748_v5 = vadd.f32 %v1261_v2, %v1474_v53  ;;  %v739_v7 = vpop.f32.mrb[17].mxu1 }
 0x10d   : > { %v771_v63 = vmax.f32 %v567_v54, 0.0  ;;  %v740_v10 = vadd.f32 %v1474_v53, %v739_v7  ;;  %v1262_v11 = vpop.f32.mrb[18].mxu1 }
 0x10e   : > { %v854_v4 = vpack.c.bf16 %v773_v58, %v772_v56  ;;  %v816_v14 = vmax.f32 %v748_v5, 0.0  ;;  %v751_v15 = vadd.f32 %v1262_v11, %v1474_v53  ;;  %v742_v16 = vpop.f32.mrb[19].mxu1 }
 0x10f   : > { %v853_v8 = vpack.c.bf16 %v771_v63, %v770_v61  ;;  %v1221_v9 = vpop.f32.mrb[20].mxu0  ;;  %v814_v19 = vmax.f32 %v740_v10, 0.0  ;;  %v743_v20 = vadd.f32 %v1474_v53, %v742_v16 }
 0x110   : > { %v588_v12 = vadd.f32 %v1221_v9, %v1474_v53  ;;  %v579_v13 = vpop.f32.mrb[21].mxu0  ;;  %v817_v24 = vmax.f32 %v751_v15, 0.0 }
 0x111   : > { %v580_v17 = vadd.f32 %v1474_v53, %v579_v13  ;;  %v1222_v18 = vpop.f32.mrb[22].mxu0  ;;  %1147 = vmatprep.subr.bf16.mxu1 %v853_v8  ;;  %v815_v28 = vmax.f32 %v743_v20, 0.0  ;;  %v836_v20 = vcombine.high %v1469_v52, %v1469_v52 }
 0x112   : > { %v591_v21 = vadd.f32 %v1222_v18, %v1474_v53  ;;  %v582_v22 = vpop.f32.mrb[23].mxu0  ;;  %1148 = vmatpush3.bf16.msra.mxu1 %v1483_v6  ;;  %v776_v32 = vmax.f32 %v588_v12, 0.0  ;;  %v1553_v36 = vpack.c.bf16 %v817_v24, %v816_v14 }
 0x113   : > { %v583_v25 = vadd.f32 %v1474_v53, %v582_v22  ;;  %1149 = vmatprep.subr.bf16.mxu1 %v854_v4  ;;  %v774_v37 = vmax.f32 %v580_v17, 0.0  ;;  %v1555_v39 = vpack.c.bf16 %v815_v28, %v814_v19 }
 0x114   : > { %v777_v33 = vmax.f32 %v591_v21, 0.0 }
 0x115   : > { %v775_v38 = vmax.f32 %v583_v25, 0.0  ;;  %v841_v25 = vpack.c.bf16 %v1465_v48, %v1465_v48 }
 0x116   : > { %v856_v40 = vpack.c.bf16 %v777_v33, %v776_v32  ;;  %1150 = vmatpush3.bf16.msra.mxu1 %v1480_v3  ;;  %v844_v32 = vpack.c.bf16 %v836_v20, %v836_v20 }
 0x117   : > { %v855_v41 = vpack.c.bf16 %v775_v38, %v774_v37  ;;  %v1225_v42 = vpop.f32.mrb[24].mxu0 }
 0x118   : > { %v604_v6 = vadd.f32 %v1225_v42, %v1474_v53  ;;  %v595_v43 = vpop.f32.mrb[25].mxu0 }
 0x119   : > { %v596_v44 = vadd.f32 %v1474_v53, %v595_v43  ;;  %v1226_v45 = vpop.f32.mrb[26].mxu0  ;;  %1151 = vmatprep.subr.bf16.mxu1 %v855_v41 }
 0x11a   : > { %v607_v46 = vadd.f32 %v1226_v45, %v1474_v53  ;;  %v598_v47 = vpop.f32.mrb[27].mxu0  ;;  %1152 = vmatpush3.bf16.msra.mxu1 %v1499_v34  ;;  %v780_v50 = vmax.f32 %v604_v6, 0.0 }
 0x11b   : > { %v599_v49 = vadd.f32 %v1474_v53, %v598_v47  ;;  %1153 = vmatprep.subr.bf16.mxu1 %v856_v40  ;;  %v778_v3 = vmax.f32 %v596_v44, 0.0 }
 0x11c   : > { %v781_v51 = vmax.f32 %v607_v46, 0.0 }
 0x11d   : > { %v779_v54 = vmax.f32 %v599_v49, 0.0 }
 0x11e   : > { %v858_v55 = vpack.c.bf16 %v781_v51, %v780_v50  ;;  %1154 = vmatpush3.bf16.msra.mxu1 %v1496_v31 }
 0x11f   : > { %v857_v56 = vpack.c.bf16 %v779_v54, %v778_v3  ;;  %v1229_v58 = vpop.f32.mrb[28].mxu0 }
 0x120   : > { %v620_v61 = vadd.f32 %v1229_v58, %v1474_v53  ;;  %v611_v63 = vpop.f32.mrb[29].mxu0 }
 0x121   : > { %v612_v2 = vadd.f32 %v1474_v53, %v611_v63  ;;  %v1230_v4 = vpop.f32.mrb[30].mxu0  ;;  %1155 = vmatprep.subr.bf16.mxu1 %v857_v56 }
 0x122   : > { %v623_v34 = vadd.f32 %v1230_v4, %v1474_v53  ;;  %v614_v5 = vpop.f32.mrb[31].mxu0  ;;  %1156 = vmatpush3.bf16.msra.mxu1 %v1515_v1  ;;  %v784_v8 = vmax.f32 %v620_v61, 0.0 }
 0x123   : > { %v615_v7 = vadd.f32 %v1474_v53, %v614_v5  ;;  %1157 = vmatprep.subr.bf16.mxu1 %v858_v55  ;;  %v782_v31 = vmax.f32 %v612_v2, 0.0 }
 0x124   : > { %v785_v9 = vmax.f32 %v623_v34, 0.0 }
 0x125   : > { %v783_v10 = vmax.f32 %v615_v7, 0.0 }
 0x126   : > { %v860_v11 = vpack.c.bf16 %v785_v9, %v784_v8  ;;  %1158 = vmatpush3.bf16.msra.mxu1 %v1512_v62 }
 0x127   : > { %v859_v12 = vpack.c.bf16 %v783_v10, %v782_v31  ;;  %v1233_v13 = vpop.f32.mrb[32].mxu0 }
 0x128   : > { %v636_v14 = vadd.f32 %v1233_v13, %v1474_v53  ;;  %v627_v15 = vpop.f32.mrb[33].mxu0 }
 0x129   : > { %v628_v16 = vadd.f32 %v1474_v53, %v627_v15  ;;  %1159 = vmatprep.subr.bf16.mxu1 %v859_v12  ;;  %v1234_v17 = vpop.f32.mrb[34].mxu0 }
 0x12a   : > { %v788_v1 = vmax.f32 %v636_v14, 0.0  ;;  %v639_v18 = vadd.f32 %v1234_v17, %v1474_v53  ;;  %1160 = vmatpush3.bf16.msra.mxu1 %v1531_v35  ;;  %v630_v19 = vpop.f32.mrb[35].mxu0 }
 0x12b   : > { %v631_v62 = vadd.f32 %v1474_v53, %v630_v19  ;;  %1161 = vmatprep.subr.bf16.mxu1 %v860_v11  ;;  %v786_v22 = vmax.f32 %v628_v16, 0.0  ;;  %v1108_v11 = vld [vmem:[%s1622_s5] ss:$0 sm:$0xff] }
 0x12c   : > { %v789_v21 = vmax.f32 %v639_v18, 0.0 }
 0x12d   : > { %v787_v24 = vmax.f32 %v631_v62, 0.0 }
 0x12e   : > { %v862_v28 = vpack.c.bf16 %v789_v21, %v788_v1  ;;  %1162 = vmatpush3.bf16.msra.mxu1 %v1528_v30 }
 0x12f   : > { %v861_v33 = vpack.c.bf16 %v787_v24, %v786_v22  ;;  %v1237_v37 = vpop.f32.mrb[36].mxu0  ;;  %1169 = vmatprep.subr.bf16.mxu1 %v1510_v60 }
 0x130   : > { %v652_v35 = vadd.f32 %v1237_v37, %v1474_v53  ;;  %v643_v38 = vpop.f32.mrb[37].mxu0 }
 0x131   : > { %v644_v40 = vadd.f32 %v1474_v53, %v643_v38  ;;  %v1238_v41 = vpop.f32.mrb[38].mxu0  ;;  %910 = vmatmul.mubr.bf16.vlgmr.msra.gmra.mrb[20].mxu1 %v841_v25 }
 0x132   : > { %v792_v42 = vmax.f32 %v652_v35, 0.0  ;;  %v655_v6 = vadd.f32 %v1238_v41, %v1474_v53  ;;  %1170 = vmatpush3.bf16.msra.mxu1 %v861_v33  ;;  %v646_v48 = vpop.f32.mrb[39].mxu0  ;;  %949 = vmatprep.mubr.bf16.mxu1 %v844_v32 }
 0x133   : > { %v647_v30 = vadd.f32 %v1474_v53, %v646_v48  ;;  %1171 = vmatprep.subr.bf16.mxu1 %v1508_v57  ;;  %v790_v44 = vmax.f32 %v644_v40, 0.0 }
 0x134   : > { %v793_v43 = vmax.f32 %v655_v6, 0.0 }
 0x135   : > { %v791_v60 = vmax.f32 %v647_v30, 0.0 }
 0x136   : > { %v864_v45 = vpack.c.bf16 %v793_v43, %v792_v42  ;;  %1172 = vmatpush3.bf16.msra.mxu1 %v862_v28 }
 0x137   : > { %v863_v46 = vpack.c.bf16 %v791_v60, %v790_v44  ;;  %v1241_v47 = vpop.f32.mrb[40].mxu0  ;;  %1173 = vmatprep.subr.bf16.mxu1 %v1526_v27 }
 0x138   : > { %v668_v49 = vadd.f32 %v1241_v47, %v1474_v53  ;;  %v659_v50 = vpop.f32.mrb[41].mxu0 }
 0x139   : > { %v660_v51 = vadd.f32 %v1474_v53, %v659_v50  ;;  %v1242_v3 = vpop.f32.mrb[42].mxu0 }
 0x13a   : > { %v796_v54 = vmax.f32 %v668_v49, 0.0  ;;  %v671_v55 = vadd.f32 %v1242_v3, %v1474_v53  ;;  %1174 = vmatpush3.bf16.msra.mxu1 %v863_v46  ;;  %v662_v57 = vpop.f32.mrb[43].mxu0 }
 0x13b   : > { %v663_v56 = vadd.f32 %v1474_v53, %v662_v57  ;;  %1175 = vmatprep.subr.bf16.mxu1 %v1524_v23  ;;  %v794_v61 = vmax.f32 %v660_v51, 0.0  ;;  %v843_v53 = vpack.c.bf16 %v1469_v52, %v1469_v52  ;;  %v958_v23 = vld [vmem:[%s1621_s4] sm:$0xff] }
 0x13c   : > { %v797_v58 = vmax.f32 %v671_v55, 0.0 }
 0x13d   : > { %v795_v63 = vmax.f32 %v663_v56, 0.0 }
 0x13e   : > { %v866_v2 = vpack.c.bf16 %v797_v58, %v796_v54  ;;  %1176 = vmatpush3.bf16.msra.mxu1 %v864_v45 }
 0x13f   : > { %v865_v27 = vpack.c.bf16 %v795_v63, %v794_v61  ;;  %1177 = vmatprep.subr.bf16.mxu1 %v1542_v0 }
 0x142   : > { %1178 = vmatpush3.bf16.msra.mxu1 %v865_v27 }
 0x143   : > { %1179 = vmatprep.subr.bf16.mxu1 %v1540_v59  ;;  %v959_v59 = vld [vmem:[%s1621_s4 + $0x8] sm:$0xff] }
 0x144   : > { %v960_v0 = vpack.c.bf16 %v959_v59, %v958_v23 }
 0x146   : > { %1180 = vmatpush3.bf16.msra.mxu1 %v866_v2 }
 0x147   : > { %1181 = vmatprep.subr.bf16.mxu1 %v1555_v39  ;;  %v1298_v39 = vmov 0.0  }
 0x14a   : > { %1182 = vmatpush3.bf16.msra.mxu1 %v1494_v29 }
 0x14b   : > { %1183 = vmatprep.subr.bf16.mxu1 %v1553_v36 }
 0x14e   : > { %1184 = vmatpush3.bf16.msra.mxu1 %v1492_v26 }
 0x14f   : > { %1263 = vmatprep.subr.bf16.mxu1 %v1298_v39 }
 0x151   : > { %950 = vmatmul.mubr.bf16.vlgmr.msra.gmra.mrb[24].mxu1 %v843_v53 }
 0x152   : > { %1264 = vmatpush3.bf16.msra.mxu1 %v960_v0  ;;  %1265 = vmatprep.mubr.msk.bf16.mxu1 %vm1299_vm2, %v1298_v39 }
 0x204   : > { %v1163_v52 = vpop.f32.mrb[20].mxu1 }
 0x205   : > { %v1164_v29 = vpop.f32.mrb[21].mxu1 }
 0x206   : > { %v1165_v26 = vadd.f32 %v1164_v29, %v1163_v52  ;;  %v1166_v36 = vpop.f32.mrb[22].mxu1 }
 0x207   : > { %v1167_v4 = vpop.f32.mrb[23].mxu1 }
 0x224   : > { %v1185_v34 = vpop.f32.mrb[24].mxu1 }
 0x225   : > { %v1186_v5 = vpop.f32.mrb[25].mxu1 }
 0x226   : > { %v1187_v7 = vadd.f32 %v1186_v5, %v1185_v34  ;;  %v1188_v8 = vpop.f32.mrb[26].mxu1 }
 0x227   : > { %v1189_v9 = vpop.f32.mrb[27].mxu1 }
 0x228   : > { %v952_v31 = vadd.f32 %v1187_v7, %v1165_v26 }
 0x22a   : > { %v957_v10 = vpack.c.bf16 %v952_v31, %v952_v31 }
 0x22c   : > { %1266 = vmatmul.mubr.msk.bf16.vlgmr.msra.gmra.mrb[28].mxu1 %vm968_vm3, %v957_v10 }
 0x2ff   : > { %v1006_v12 = vpop.f32.mrb[28].mxu1 }
 0x300   : > { %v1007_v13 = vadd.f32 %v1108_v11, %v1006_v12  ;;  %v1267_v14 = vpop.f32.mrb[29].mxu1 }
 0x301   : > { %v1009_v15 = vpop.f32.mrb[30].mxu1 }
 0x302   : > { %1013 = vst.msk [vmem:[%s251_s29] sm:$0x3] %vm1012_vm4, %v1007_v13  ;;  %v1268_v16 = vpop.f32.mrb[31].mxu1 }
 0x303 PF: > { %s16_s21 = sadd.s32 1, %s1295_s21  }
 0x304   : > { %p13_p5 = scmp.ge.s32.totalorder %s16_s21, 4  }
 0x306   :  { %15 = sbr.rel (!%p13_p5) target bundleno = 1 (0x1), region = 74 }

</bundles_post_ra>
